<compile_context>
chip_gen: v7x
topology: tpu7x:2x2x1
jax: 0.10.0
libtpu: 0.0.40
codegen_flags: <defaults>
</compile_context>

<pallas_src>
import jax
import jax.numpy as jnp
from jax.experimental import pallas as pl
from jax.experimental.pallas import tpu as pltpu

# --- concrete hyperparameters (one instantiation of the parametrized module) ---
IN_CHANNELS = 4
OUT_CHANNELS = 8
KERNEL_SIZE = 3
STRIDE = 1
PADDING = (KERNEL_SIZE - 1) // 2  # padding_expression(3, 1) == 1


def _conv_kernel(cols_ref, w_ref, o_ref):
    """One batch-block per grid step — NB lane-dense matmuls (bias folded in).

    cols_ref: (NB, K1, HW)   im2col'd inputs, K1 = KH*KW*Cin + 1 (trailing ones row)
    w_ref:    (CoutP, K1)    flattened weight, last column = bias
    o_ref:    (NB, CoutP, HW) lane-dense output block
    """
    nb = cols_ref.shape[0]
    for i in range(nb):  # static unroll; NB is small, weight stays resident
        o_ref[i] = jnp.dot(
            w_ref[...], cols_ref[i],
            preferred_element_type=jnp.float32).astype(o_ref.dtype)


def conv2d_pallas(x_nchw, weight, bias, *, stride=STRIDE, padding=PADDING, nb=None):
    """Conv2d forward, semantics of nn.Conv2d(Cin, Cout, k, stride, padding).

    x_nchw: (N, Cin, H, W) float32
    weight: (Cout, Cin, KH, KW) float32   (PyTorch layout)
    bias:   (Cout,) float32
    returns (N, Cout, H_out, W_out) float32
    """
    N, Cin, H, W = x_nchw.shape
    Cout, _, KH, KW = weight.shape
    p, s = padding, stride
    H_out = (H + 2 * p - KH) // s + 1
    W_out = (W + 2 * p - KW) // s + 1
    HW = H_out * W_out
    K = KH * KW * Cin
    K1 = K + 1  # +1 row of ones for the folded bias

    # --- wrapper-side im2col, built directly in (N, K1, HW): no transposes ---
    x_pad = jnp.pad(x_nchw, ((0, 0), (0, 0), (p, p), (p, p)))   # (N, Cin, Hp, Wp)
    taps = []
    for kh in range(KH):
        for kw in range(KW):
            tap = x_pad[:, :,
                        kh: kh + s * (H_out - 1) + 1: s,
                        kw: kw + s * (W_out - 1) + 1: s]        # (N, Cin, H_out, W_out)
            taps.append(tap.reshape(N, Cin, HW))
    taps.append(jnp.ones((N, 1, HW), x_nchw.dtype))              # bias row
    cols = jnp.concatenate(taps, axis=1)                         # (N, K1, HW)

    # weight (Cout,Cin,KH,KW) -> (Cout, KH,KW,Cin) -> (Cout, K); append bias column.
    w2d = jnp.transpose(weight, (0, 2, 3, 1)).reshape(Cout, K)
    w_aug = jnp.concatenate([w2d, bias.reshape(Cout, 1)], axis=1)  # (Cout, K1)

    # Pad Cout to a multiple of 8 (sublane-dense output) for other NAS points.
    CoutP = -(-Cout // 8) * 8
    if CoutP != Cout:
        w_aug = jnp.pad(w_aug, ((0, CoutP - Cout), (0, 0)))

    # Batch-block size: one grid step for small N, amortizing ~0.35 us/step cost.
    if nb is None:
        nb = min(N, 8)
    Np = -(-N // nb) * nb
    if Np != N:
        cols = jnp.pad(cols, ((0, Np - N), (0, 0), (0, 0)))

    out_flat = pl.pallas_call(
        _conv_kernel,
        out_shape=jax.ShapeDtypeStruct((Np, CoutP, HW), x_nchw.dtype),
        grid_spec=pltpu.PrefetchScalarGridSpec(
            num_scalar_prefetch=0,
            grid=(Np // nb,),
            in_specs=[
                pl.BlockSpec((nb, K1, HW), lambda n: (n, 0, 0)),
                pl.BlockSpec((CoutP, K1), lambda n: (0, 0)),
            ],
            out_specs=pl.BlockSpec((nb, CoutP, HW), lambda n: (n, 0, 0)),
        ),
        compiler_params=pltpu.CompilerParams(
            dimension_semantics=("arbitrary",)),
    )(cols, w_aug)

    # Free slice + row-major reshape back to NCHW (no transpose needed).
    return out_flat[:N, :Cout].reshape(N, Cout, H_out, W_out)


if __name__ == "__main__":
    key = jax.random.PRNGKey(0)
    kx, kw, kb = jax.random.split(key, 3)

    # Input consistent with inputs[0] = (N, Cin, H, W)
    x = jax.random.normal(kx, (2, IN_CHANNELS, 16, 16), dtype=jnp.float32)

    # Deterministic parameter init (PyTorch-like uniform bound).
    fan_in = IN_CHANNELS * KERNEL_SIZE * KERNEL_SIZE
    bound = 1.0 / (fan_in ** 0.5)
    weight = jax.random.uniform(
        kw, (OUT_CHANNELS, IN_CHANNELS, KERNEL_SIZE, KERNEL_SIZE),
        minval=-bound, maxval=bound, dtype=jnp.float32)
    bias = jax.random.uniform(
        kb, (OUT_CHANNELS,), minval=-bound, maxval=bound, dtype=jnp.float32)

    out = conv2d_pallas(x, weight, bias)
    out = jax.block_until_ready(out)

    # Reference check against XLA conv (NCHW, same semantics as nn.Conv2d).
    ref = jax.lax.conv_general_dilated(
        x, weight, window_strides=(STRIDE, STRIDE),
        padding=[(PADDING, PADDING), (PADDING, PADDING)],
        dimension_numbers=("NCHW", "OIHW", "NCHW"))
    ref = ref + bias.reshape(1, OUT_CHANNELS, 1, 1)

    assert out.shape == ref.shape
    assert jnp.allclose(out, ref, atol=1e-4, rtol=1e-4)

    print("KERNEL_OK")
</pallas_src>

<mosaic_0001>
module attributes {stable_mosaic.version = 11 : i64} {
  func.func @_conv_kernel(%arg0: i32, %arg1: memref<2x37x256xf32, #tpu.memory_space<vmem>>, %arg2: memref<8x37xf32, #tpu.memory_space<vmem>>, %arg3: memref<2x8x256xf32, #tpu.memory_space<vmem>>) attributes {dimension_semantics = [#tpu.dimension_semantics<arbitrary>], iteration_bounds = array<i64: 1>, scalar_prefetch = 0 : i64, scratch_operands = 0 : i64, tpu.core_type = #tpu.core_type<tc>, window_params = [{transform_indices = @transform_0, window_bounds = array<i64: 2, 37, 256>}, {pipeline_mode = #tpu.pipeline_mode<synchronous>, transform_indices = @transform_1, window_bounds = array<i64: 8, 37>}, {transform_indices = @transform_2, window_bounds = array<i64: 2, 8, 256>}]} {
    %c0 = arith.constant 0 : index
    %c0_0 = arith.constant 0 : index
    %0 = vector.load %arg2[%c0, %c0_0] : memref<8x37xf32, #tpu.memory_space<vmem>>, vector<8x37xf32>
    %c0_1 = arith.constant 0 : index
    %c0_2 = arith.constant 0 : index
    %c0_3 = arith.constant 0 : index
    %1 = vector.load %arg1[%c0_1, %c0_2, %c0_3] : memref<2x37x256xf32, #tpu.memory_space<vmem>>, vector<1x37x256xf32>
    %2 = vector.shape_cast %1 : vector<1x37x256xf32> to vector<37x256xf32>
    %cst = arith.constant dense<0.000000e+00> : vector<8x256xf32>
    %3 = tpu.matmul %0, %2, %cst {dimension_numbers = #tpu.dot_dimension_numbers<[1], [0], [0], [1], [0, 0, 1, 1], [], []>} : vector<8x37xf32>, vector<37x256xf32>, vector<8x256xf32> -> vector<8x256xf32>
    %c0_4 = arith.constant 0 : index
    %c0_5 = arith.constant 0 : index
    %c0_6 = arith.constant 0 : index
    %4 = vector.load %arg3[%c0_4, %c0_5, %c0_6] : memref<2x8x256xf32, #tpu.memory_space<vmem>>, vector<1x8x256xf32>
    %5 = vector.shape_cast %4 : vector<1x8x256xf32> to vector<8x256xf32>
    %6 = vector.shape_cast %3 : vector<8x256xf32> to vector<1x8x256xf32>
    tpu.vector_store %arg3[%c0_4, %c0_5, %c0_6], %6 {strides = array<i32>} : memref<2x8x256xf32, #tpu.memory_space<vmem>>, vector<1x8x256xf32>,
    %c0_7 = arith.constant 0 : index
    %c0_8 = arith.constant 0 : index
    %7 = vector.load %arg2[%c0_7, %c0_8] : memref<8x37xf32, #tpu.memory_space<vmem>>, vector<8x37xf32>
    %c1 = arith.constant 1 : index
    %c0_9 = arith.constant 0 : index
    %c0_10 = arith.constant 0 : index
    %8 = vector.load %arg1[%c1, %c0_9, %c0_10] : memref<2x37x256xf32, #tpu.memory_space<vmem>>, vector<1x37x256xf32>
    %9 = vector.shape_cast %8 : vector<1x37x256xf32> to vector<37x256xf32>
    %cst_11 = arith.constant dense<0.000000e+00> : vector<8x256xf32>
    %10 = tpu.matmul %7, %9, %cst_11 {dimension_numbers = #tpu.dot_dimension_numbers<[1], [0], [0], [1], [0, 0, 1, 1], [], []>} : vector<8x37xf32>, vector<37x256xf32>, vector<8x256xf32> -> vector<8x256xf32>
    %c1_12 = arith.constant 1 : index
    %c0_13 = arith.constant 0 : index
    %c0_14 = arith.constant 0 : index
    %11 = vector.load %arg3[%c1_12, %c0_13, %c0_14] : memref<2x8x256xf32, #tpu.memory_space<vmem>>, vector<1x8x256xf32>
    %12 = vector.shape_cast %11 : vector<1x8x256xf32> to vector<8x256xf32>
    %13 = vector.shape_cast %10 : vector<8x256xf32> to vector<1x8x256xf32>
    tpu.vector_store %arg3[%c1_12, %c0_13, %c0_14], %13 {strides = array<i32>} : memref<2x8x256xf32, #tpu.memory_space<vmem>>, vector<1x8x256xf32>,
    return
  }
  func.func @transform_0(%arg0: i32) -> (i32, i32, i32) {
    %c0_i32 = arith.constant 0 : i32
    %c0_i32_0 = arith.constant 0 : i32
    %c0_i32_1 = arith.constant 0 : i32
    return %arg0, %c0_i32, %c0_i32_0 : i32, i32, i32
  }
  func.func @transform_1(%arg0: i32) -> (i32, i32) {
    %c0_i32 = arith.constant 0 : i32
    %c0_i32_0 = arith.constant 0 : i32
    %c0_i32_1 = arith.constant 0 : i32
    return %c0_i32, %c0_i32_0 : i32, i32
  }
  func.func @transform_2(%arg0: i32) -> (i32, i32, i32) {
    %c0_i32 = arith.constant 0 : i32
    %c0_i32_0 = arith.constant 0 : i32
    %c0_i32_1 = arith.constant 0 : i32
    return %arg0, %c0_i32, %c0_i32_0 : i32, i32, i32
  }
}

</mosaic_0001>

<bundles_post_ra>
// kernel: tpu_custom_call.1
= control target key start
LH: loop header
LB: loop body
LE: loop exit
PB: predicated region body
PF: predicated region fallthrough
CT: control target
= control target key end

     0   :  { %v278_v7 = vmov 0.0   ;;  %vm27_vm0 = vcmask 1044480   ;;  %s372_s0 = inlined_call_operand.vmem [shape: f32[2,37,256], index: 0, kind: input, shape index: {}]   ;;  %s373_s1 = inlined_call_operand.vmem [shape: f32[8,37], index: 1, kind: input, shape index: {}]   ;;  %s374_s2 = inlined_call_operand.hbm [shape: f32[2,8,256], index: 2, kind: output, shape index: {}]  }
   0x1   :  { %v14_v0 = vld [vmem:[%s372_s0 + $0x8] sm:$0xff]  ;;  %v16_v1 = vld [vmem:[%s372_s0 + $0x18] sm:$0xff]  ;;  %v13_v5 = vld [vmem:[%s372_s0] sm:$0xff]  ;;  %98 = vmatprep.mubr.f32.mxu0 %v278_v7  ;;  %192 = vmatprep.mubr.f32.mxu1 %v278_v7 }
   0x2   :  { %v222_v2 = vld [vmem:[%s372_s0 + $0x58] sm:$0xff]  ;;  %v234_v3 = vpack.c.bf16 %v16_v1, %v14_v0  ;;  %v224_v4 = vld [vmem:[%s372_s0 + $0x68] sm:$0xff]  ;;  %v15_v6 = vld [vmem:[%s372_s0 + $0x10] sm:$0xff] }
   0x3   :  { %v242_v8 = vpack.c.bf16 %v224_v4, %v222_v2  ;;  %v236_v9 = vpack.c.bf16 %v15_v6, %v13_v5  ;;  %v221_v10 = vld [vmem:[%s372_s0 + $0x50] sm:$0xff]  ;;  %v223_v11 = vld [vmem:[%s372_s0 + $0x60] sm:$0xff]  ;;  %v18_v12 = vld [vmem:[%s372_s0 + $0x28] sm:$0xff] }
   0x4   :  { %235 = vmatprep.subr.bf16.mxu0 %v234_v3  ;;  %v244_v13 = vpack.c.bf16 %v223_v11, %v221_v10  ;;  %v20_v14 = vld [vmem:[%s372_s0 + $0x38] sm:$0xff]  ;;  %v228_v16 = vld [vmem:[%s372_s0 + $0x88] sm:$0xff]  ;;  %v17_v19 = vld [vmem:[%s372_s0 + $0x20] sm:$0xff] }
   0x5   :  { %v226_v15 = vld [vmem:[%s372_s0 + $0x78] sm:$0xff]  ;;  %243 = vmatprep.subr.bf16.mxu1 %v242_v8  ;;  %237 = vmatpush1.bf16.msra.mxu0 %v236_v9  ;;  %v238_v17 = vpack.c.bf16 %v20_v14, %v18_v12  ;;  %v19_v20 = vld [vmem:[%s372_s0 + $0x30] sm:$0xff]  ;;  %v227_v23 = vld [vmem:[%s372_s0 + $0x80] sm:$0xff] }
   0x6   :  { %v246_v18 = vpack.c.bf16 %v228_v16, %v226_v15  ;;  %v225_v21 = vld [vmem:[%s372_s0 + $0x70] sm:$0xff]  ;;  %245 = vmatpush1.bf16.msra.mxu1 %v244_v13  ;;  %v240_v22 = vpack.c.bf16 %v19_v20, %v17_v19  ;;  %v22_v25 = vld [vmem:[%s372_s0 + $0x48] sm:$0x1f]  ;;  %v230_v26 = vld [vmem:[%s372_s0 + $0x98] sm:$0x1f] }
   0x7   :  { %239 = vmatprep.subr.bf16.mxu0 %v238_v17  ;;  %v248_v24 = vpack.c.bf16 %v227_v23, %v225_v21 }
   0x8   :  { %247 = vmatprep.subr.bf16.mxu1 %v246_v18 }
   0x9   :  { %7 = vsyncpa [#allocation3], 0  ;;  %241 = vmatpush1.bf16.msra.mxu0 %v240_v22  ;;  %v21_v27 = vld [vmem:[%s372_s0 + $0x40] sm:$0x1f]  ;;  %v229_v28 = vld [vmem:[%s372_s0 + $0x90] sm:$0x1f] }
   0xa   :  { %249 = vmatpush1.bf16.msra.mxu1 %v248_v24  ;;  %218 = vmatprep.subr.msk.mxu0 %vm27_vm0, %v22_v25  ;;  %v12_v29 = vld [vmem:[%s373_s1] sm:$0xff]  ;;  %vm23_vm1 = vcmask 302080   ;;  %s279_s23 = smov [#allocation2]  }
   0xb   :  { %231 = vmatprep.subr.msk.mxu1 %vm27_vm0, %v230_v26  ;;  %s207_s24 = sshll.u32 %s279_s23, 4  ;;  %s208_s24 = int_to_ptr.vmem [resolvable:$true] %s207_s24 }
   0xc   :  { %s254_s0 = scalar_lea.vmem %s208_s24, 512  ;;  %p259_p1 = scmp.lt.s32.totalorder %s208_s24, %s208_s24 }
   0xd   :  { %219 = vmatpush1.msk.msra.mxu0 %vm27_vm0, %v21_v27  ;;  %p255_p0 = scmp.ne.s32.totalorder %s208_s24, %s254_s0  ;;  %p260_p2 = scmp.lt.s32.totalorder %s254_s0, %s254_s0 }
   0xe   :  { %232 = vmatpush1.msk.msra.mxu1 %vm27_vm0, %v229_v28  ;;  %220 = vmatmul.mubr.msk.f32.vlgmr.msra.gmra.mrb[0].mxu0 %vm23_vm1, %v12_v29 }
   0xf   :  { %233 = vmatmul.mubr.msk.f32.vlgmr.msra.gmra.mrb[0].mxu1 %vm23_vm1, %v12_v29  ;;  %p261_p3 = por %p260_p2, %p259_p1 }
  0x11   :  { %p262_p4 = pnand %p261_p3, %p255_p0 }
  0xe1   :  { %v100_v30 = vpop.f32.mrb[0].mxu0 }
  0xe2   :  { %105 = vst [vmem:[#allocation2] sm:$0xff] %v100_v30  ;;  %v194_v31 = vpop.f32.mrb[0].mxu1  ;;  %v102_v32 = vpop.f32.mrb[1].mxu0 }
  0xe3   :  { %200 = vst [vmem:[#allocation2 + $0x10] sm:$0xff] %v194_v31  ;;  %106 = vst [vmem:[#allocation2 + $0x8] sm:$0xff] %v102_v32  ;;  %v196_v33 = vpop.f32.mrb[1].mxu1 }
  0xe4   :  { %201 = vst [vmem:[#allocation2 + $0x18] sm:$0xff] %v196_v33 }
  0xe5   :  { %265 = shalt.err (!%p262_p4)
}
  0xe6   :  { %s266_s26 = scalar_lea.hbm %s374_s2, 512 }
  0xe7   :  { %p267_p5 = scmp.ne.s32.totalorder %s374_s2, %s266_s26  ;;  %p270_p6 = scmp.lt.u32.totalorder %s266_s26, %s374_s2 }
  0xe9   :  { %p272_p7 = pnand %p270_p6, %p267_p5 }
  0xeb   :  { %275 = shalt.err (!%p272_p7)
}
  0xec   :  { %s280_s3 = smov 256   ;;  %s281_s4 = smov 16  }
  0xed   :  { %213 = dma.vmem_to_hbm [thread:$0]  %s208_s24, 512, %s374_s2, [#allocation3], %s280_s3, %s280_s3, %s281_s4  }
  0xee   :  { %276 = dma.done.wait [#allocation3], 512  }
  0xef   :  { %277 = vsyncadd [#allocation3], 4294966784 }
  0xf0   :  { %217 = vsyncpa [#allocation3], 1 }

</bundles_post_ra>
